<compile_context>
chip_gen: v7x
topology: tpu7x:2x2x1
jax: 0.10.0
libtpu: 0.0.40
codegen_flags: <defaults>
</compile_context>

<pallas_src>
import math

import jax
import jax.numpy as jnp
from jax.experimental import pallas as pl
from jax.experimental.pallas import tpu as pltpu


def _attn_kernel(x_ref, mask_ref, wqkv_ref, bqkv_ref, wout_ref, bout_ref, o_ref):
    # x_ref:    (G, t, d_in)       f32   (G heads batched per grid step)
    # mask_ref: (G, t, t)          int8  (nonzero => masked)
    # wqkv_ref: (d_in, 3*d_model)  f32   (Q columns pre-scaled by 1/sqrt(dm))
    # bqkv_ref: (1, 3*d_model)     f32   (Q part pre-scaled)
    # wout_ref: (d_model, d_model) f32   ((in, out) layout)
    # bout_ref: (1, d_model)       f32
    # o_ref:    (G, t, d_model)    f32
    G, t, d_in = x_ref.shape
    d_model = o_ref.shape[-1]

    # --- QKV projection: one MXU matmul over all G*t rows ---------------------
    x2 = x_ref[...].reshape(G * t, d_in)               # merge leading dims (free)
    qkv = jnp.dot(x2, wqkv_ref[...],
                  preferred_element_type=jnp.float32) + bqkv_ref[...]
    q = qkv[:, 0 * d_model:1 * d_model].reshape(G, t, d_model)   # already scaled
    k = qkv[:, 1 * d_model:2 * d_model].reshape(G, t, d_model)
    v = qkv[:, 2 * d_model:3 * d_model].reshape(G, t, d_model)

    # --- attention scores: contract feature axis directly (no k.T) ------------
    scores = jnp.einsum('gqd,gkd->gqk', q, k,
                        preferred_element_type=jnp.float32)       # (G, t, t)

    # masked_fill with a large finite negative (NaN-safe vs -inf)
    masked = mask_ref[...].astype(jnp.float32) > 0.0
    scores = jnp.where(masked, jnp.float32(-1e30), scores)

    # --- numerically stable softmax over the key axis (f32) -------------------
    m = jnp.max(scores, axis=-1, keepdims=True)
    e = jnp.exp(scores - m)
    denom = jnp.sum(e, axis=-1, keepdims=True)
    p = e / denom                                                  # (G, t, t)

    attn = jnp.einsum('gqk,gkd->gqd', p, v,
                      preferred_element_type=jnp.float32)          # (G, t, dm)

    # --- output projection: one 2-D matmul over all G*t rows ------------------
    out2 = jnp.dot(attn.reshape(G * t, d_model), wout_ref[...],
                   preferred_element_type=jnp.float32) + bout_ref[...]
    o_ref[...] = out2.reshape(G, t, d_model).astype(o_ref.dtype)


def _pick_group_size(bc, t, target_rows=256):
    """Largest divisor of bc giving roughly target_rows MXU rows per grid step."""
    g = max(1, min(bc, max(1, target_rows // max(t, 1))))
    while bc % g != 0:
        g -= 1
    return g


def self_attention_feature_extractor(x, mask, w_qkv, b_qkv, w_out, b_out,
                                     *, group_size=None):
    """x: (B, C, d_input, t) f32; mask: bool, broadcastable to (B, C, t, t) or None.
    w_qkv: (3*d_model, d_input), b_qkv: (3*d_model,)  [torch nn.Linear layout]
    w_out: (d_model, d_model),   b_out: (d_model,)    [torch nn.Linear layout]
    Returns (B, C, t, d_model)."""
    B, C, d_in, t = x.shape
    d_model = w_out.shape[0]
    BC = B * C
    G = _pick_group_size(BC, t) if group_size is None else group_size
    assert BC % G == 0, "group_size must divide B*C"

    # Glue: permute(0,1,3,2) + flatten (B,C).  Note: one extra HBM pass over x;
    # kept for guaranteed lowering (in-kernel transposed-LHS dot would remove it).
    xp = jnp.swapaxes(x, 2, 3).reshape(BC, t, d_in).astype(jnp.float32)

    if mask is None:
        mask_i8 = jnp.zeros((BC, t, t), jnp.int8)
    else:
        mask_i8 = jnp.broadcast_to(mask, (B, C, t, t)).reshape(BC, t, t)
        mask_i8 = mask_i8.astype(jnp.int8)          # 1 byte/elem instead of 4

    # Torch Linear stores (out, in) and computes x @ W.T -> kernel wants (in, out).
    scale = 1.0 / math.sqrt(d_model)
    wqkv_k = jnp.transpose(w_qkv).astype(jnp.float32)            # (d_in, 3*dm)
    # Fold the softmax scale into the Q projection (weights + bias).
    wqkv_k = jnp.concatenate([wqkv_k[:, :d_model] * scale,
                              wqkv_k[:, d_model:]], axis=1)
    bqkv_k = jnp.concatenate([b_qkv[:d_model] * scale, b_qkv[d_model:]])
    bqkv_k = bqkv_k.reshape(1, 3 * d_model).astype(jnp.float32)
    wout_k = jnp.transpose(w_out).astype(jnp.float32)            # (dm, dm)
    bout_k = b_out.reshape(1, d_model).astype(jnp.float32)

    out = pl.pallas_call(
        _attn_kernel,
        out_shape=jax.ShapeDtypeStruct((BC, t, d_model), jnp.float32),
        grid_spec=pltpu.PrefetchScalarGridSpec(
            num_scalar_prefetch=0,
            grid=(BC // G,),
            in_specs=[
                pl.BlockSpec((G, t, d_in), lambda i: (i, 0, 0)),
                pl.BlockSpec((G, t, t), lambda i: (i, 0, 0)),
                # weights/biases: constant block index -> held resident
                pl.BlockSpec((d_in, 3 * d_model), lambda i: (0, 0)),
                pl.BlockSpec((1, 3 * d_model), lambda i: (0, 0)),
                pl.BlockSpec((d_model, d_model), lambda i: (0, 0)),
                pl.BlockSpec((1, d_model), lambda i: (0, 0)),
            ],
            out_specs=pl.BlockSpec((G, t, d_model), lambda i: (i, 0, 0)),
        ),
        compiler_params=pltpu.CompilerParams(
            dimension_semantics=("parallel",),
            vmem_limit_bytes=32 * 1024 * 1024,
        ),
    )(xp, mask_i8, wqkv_k, bqkv_k, wout_k, bout_k)

    return out.reshape(B, C, t, d_model)


def reference(x, mask, w_qkv, b_qkv, w_out, b_out):
    """Pure-JAX mirror of the PyTorch forward."""
    xp = jnp.swapaxes(x, 2, 3)                                   # (B,C,t,d_in)
    qkv = xp @ jnp.transpose(w_qkv) + b_qkv
    q, k, v = jnp.split(qkv, 3, axis=-1)
    scores = (q @ jnp.swapaxes(k, -2, -1)) / math.sqrt(q.shape[-1])
    if mask is not None:
        scores = jnp.where(jnp.broadcast_to(mask, scores.shape), -jnp.inf, scores)
    w = jax.nn.softmax(scores, axis=-1)
    return (w @ v) @ jnp.transpose(w_out) + b_out


if __name__ == "__main__":
    B, C, d_input, t = 2, 4, 16, 8
    d_model = 32

    key = jax.random.PRNGKey(0)
    kx, km, k1, k2, k3, k4 = jax.random.split(key, 6)

    x = jax.random.normal(kx, (B, C, d_input, t), dtype=jnp.float32)
    # boolean mask, True => masked (never fully masking a row)
    mask = jax.random.bernoulli(km, 0.2, (B, C, t, t))
    mask = mask.at[..., 0].set(False)

    # deterministic "PyTorch-like" uniform init, torch nn.Linear layouts
    bnd_qkv = 1.0 / math.sqrt(d_input)
    bnd_out = 1.0 / math.sqrt(d_model)
    w_qkv = jax.random.uniform(k1, (3 * d_model, d_input),
                               minval=-bnd_qkv, maxval=bnd_qkv, dtype=jnp.float32)
    b_qkv = jax.random.uniform(k2, (3 * d_model,),
                               minval=-bnd_qkv, maxval=bnd_qkv, dtype=jnp.float32)
    w_out = jax.random.uniform(k3, (d_model, d_model),
                               minval=-bnd_out, maxval=bnd_out, dtype=jnp.float32)
    b_out = jax.random.uniform(k4, (d_model,),
                               minval=-bnd_out, maxval=bnd_out, dtype=jnp.float32)

    out = self_attention_feature_extractor(x, mask, w_qkv, b_qkv, w_out, b_out)
    out = jax.block_until_ready(out)

    ref = reference(x, mask, w_qkv, b_qkv, w_out, b_out)
    assert out.shape == (B, C, t, d_model)
    assert jnp.allclose(out, ref, atol=1e-4, rtol=1e-4), "mismatch vs reference"

    print("KERNEL_OK")
</pallas_src>

<mosaic_0001>
module attributes {stable_mosaic.version = 11 : i64} {
  func.func @_attn_kernel(%arg0: i32, %arg1: memref<8x8x16xf32, #tpu.memory_space<vmem>>, %arg2: memref<8x8x8xi8, #tpu.memory_space<vmem>>, %arg3: memref<16x96xf32, #tpu.memory_space<vmem>>, %arg4: memref<1x96xf32, #tpu.memory_space<vmem>>, %arg5: memref<32x32xf32, #tpu.memory_space<vmem>>, %arg6: memref<1x32xf32, #tpu.memory_space<vmem>>, %arg7: memref<8x8x32xf32, #tpu.memory_space<vmem>>) attributes {dimension_semantics = [#tpu.dimension_semantics<parallel>], iteration_bounds = array<i64: 1>, scalar_prefetch = 0 : i64, scratch_operands = 0 : i64, tpu.core_type = #tpu.core_type<tc>, window_params = [{transform_indices = @transform_0, window_bounds = array<i64: 8, 8, 16>}, {transform_indices = @transform_1, window_bounds = array<i64: 8, 8, 8>}, {pipeline_mode = #tpu.pipeline_mode<synchronous>, transform_indices = @transform_2, window_bounds = array<i64: 16, 96>}, {pipeline_mode = #tpu.pipeline_mode<synchronous>, transform_indices = @transform_3, window_bounds = array<i64: 1, 96>}, {pipeline_mode = #tpu.pipeline_mode<synchronous>, transform_indices = @transform_4, window_bounds = array<i64: 32, 32>}, {pipeline_mode = #tpu.pipeline_mode<synchronous>, transform_indices = @transform_5, window_bounds = array<i64: 1, 32>}, {transform_indices = @transform_6, window_bounds = array<i64: 8, 8, 32>}]} {
    %c0 = arith.constant 0 : index
    %c0_0 = arith.constant 0 : index
    %c0_1 = arith.constant 0 : index
    %0 = vector.load %arg1[%c0, %c0_0, %c0_1] : memref<8x8x16xf32, #tpu.memory_space<vmem>>, vector<8x8x16xf32>
    %1 = vector.shape_cast %0 : vector<8x8x16xf32> to vector<64x16xf32>
    %c0_2 = arith.constant 0 : index
    %c0_3 = arith.constant 0 : index
    %2 = vector.load %arg3[%c0_2, %c0_3] : memref<16x96xf32, #tpu.memory_space<vmem>>, vector<16x96xf32>
    %cst = arith.constant dense<0.000000e+00> : vector<64x96xf32>
    %3 = tpu.matmul %1, %2, %cst {dimension_numbers = #tpu.dot_dimension_numbers<[1], [0], [0], [1], [0, 0, 1, 1], [], []>} : vector<64x16xf32>, vector<16x96xf32>, vector<64x96xf32> -> vector<64x96xf32>
    %c0_4 = arith.constant 0 : index
    %c0_5 = arith.constant 0 : index
    %4 = vector.load %arg4[%c0_4, %c0_5] : memref<1x96xf32, #tpu.memory_space<vmem>>, vector<1x96xf32>
    %5 = vector.broadcast %4 : vector<1x96xf32> to vector<64x96xf32>
    %6 = arith.addf %3, %5 : vector<64x96xf32>
    %7 = vector.extract_strided_slice %6 {offsets = [0, 0], sizes = [64, 32], strides = [1, 1]} : vector<64x96xf32> to vector<64x32xf32>
    %8 = vector.shape_cast %7 : vector<64x32xf32> to vector<8x8x32xf32>
    %9 = vector.extract_strided_slice %6 {offsets = [0, 32], sizes = [64, 32], strides = [1, 1]} : vector<64x96xf32> to vector<64x32xf32>
    %10 = vector.shape_cast %9 : vector<64x32xf32> to vector<8x8x32xf32>
    %11 = vector.extract_strided_slice %6 {offsets = [0, 64], sizes = [64, 32], strides = [1, 1]} : vector<64x96xf32> to vector<64x32xf32>
    %12 = vector.shape_cast %11 : vector<64x32xf32> to vector<8x8x32xf32>
    "tpu.trace_start"() <{level = 10 : i32, message = "gqd,gkd->gqk"}> : () -> ()
    %cst_6 = arith.constant dense<0.000000e+00> : vector<8x8x8xf32>
    %13 = tpu.matmul %8, %10, %cst_6 {dimension_numbers = #tpu.dot_dimension_numbers<[2], [2], [1], [1], [0, 0, 0, 1, 1, 1], [0], [0]>} : vector<8x8x32xf32>, vector<8x8x32xf32>, vector<8x8x8xf32> -> vector<8x8x8xf32>
    "tpu.trace_stop"() : () -> ()
    %c0_7 = arith.constant 0 : index
    %c0_8 = arith.constant 0 : index
    %c0_9 = arith.constant 0 : index
    %14 = vector.load %arg2[%c0_7, %c0_8, %c0_9] : memref<8x8x8xi8, #tpu.memory_space<vmem>>, vector<8x8x8xi8>
    %15 = arith.sitofp %14 : vector<8x8x8xi8> to vector<8x8x8xf32>
    %cst_10 = arith.constant 0.000000e+00 : f32
    %16 = vector.broadcast %cst_10 : f32 to vector<8x8x8xf32>
    %17 = arith.cmpf ogt, %15, %16 : vector<8x8x8xf32>
    %cst_11 = arith.constant -1.000000e+30 : f32
    %18 = vector.broadcast %cst_11 : f32 to vector<8x8x8xf32>
    %19 = arith.select %17, %18, %13 : vector<8x8x8xi1>, vector<8x8x8xf32>
    %cst_12 = arith.constant dense<0xFF800000> : vector<8x8xf32>
    %20 = vector.multi_reduction <maximumf>, %19, %cst_12 [2] : vector<8x8x8xf32> to vector<8x8xf32>
    %21 = vector.shape_cast %20 : vector<8x8xf32> to vector<8x8x1xf32>
    %22 = vector.broadcast %21 : vector<8x8x1xf32> to vector<8x8x8xf32>
    %23 = arith.subf %19, %22 : vector<8x8x8xf32>
    %24 = math.exp %23 : vector<8x8x8xf32>
    %cst_13 = arith.constant dense<0.000000e+00> : vector<8x8xf32>
    %25 = vector.multi_reduction <add>, %24, %cst_13 [2] : vector<8x8x8xf32> to vector<8x8xf32>
    %26 = vector.shape_cast %25 : vector<8x8xf32> to vector<8x8x1xf32>
    %27 = vector.broadcast %26 : vector<8x8x1xf32> to vector<8x8x8xf32>
    %28 = arith.divf %24, %27 : vector<8x8x8xf32>
    "tpu.trace_start"() <{level = 10 : i32, message = "gqk,gkd->gqd"}> : () -> ()
    %cst_14 = arith.constant dense<0.000000e+00> : vector<8x8x32xf32>
    %29 = tpu.matmul %28, %12, %cst_14 {dimension_numbers = #tpu.dot_dimension_numbers<[2], [1], [1], [2], [0, 0, 0, 1, 1, 2], [0], [0]>} : vector<8x8x8xf32>, vector<8x8x32xf32>, vector<8x8x32xf32> -> vector<8x8x32xf32>
    "tpu.trace_stop"() : () -> ()
    %30 = vector.shape_cast %29 : vector<8x8x32xf32> to vector<64x32xf32>
    %c0_15 = arith.constant 0 : index
    %c0_16 = arith.constant 0 : index
    %31 = vector.load %arg5[%c0_15, %c0_16] : memref<32x32xf32, #tpu.memory_space<vmem>>, vector<32x32xf32>
    %cst_17 = arith.constant dense<0.000000e+00> : vector<64x32xf32>
    %32 = tpu.matmul %30, %31, %cst_17 {dimension_numbers = #tpu.dot_dimension_numbers<[1], [0], [0], [1], [0, 0, 1, 1], [], []>} : vector<64x32xf32>, vector<32x32xf32>, vector<64x32xf32> -> vector<64x32xf32>
    %c0_18 = arith.constant 0 : index
    %c0_19 = arith.constant 0 : index
    %33 = vector.load %arg6[%c0_18, %c0_19] : memref<1x32xf32, #tpu.memory_space<vmem>>, vector<1x32xf32>
    %34 = vector.broadcast %33 : vector<1x32xf32> to vector<64x32xf32>
    %35 = arith.addf %32, %34 : vector<64x32xf32>
    %36 = vector.shape_cast %35 : vector<64x32xf32> to vector<8x8x32xf32>
    %c0_20 = arith.constant 0 : index
    %c0_21 = arith.constant 0 : index
    %c0_22 = arith.constant 0 : index
    %37 = vector.load %arg7[%c0_20, %c0_21, %c0_22] : memref<8x8x32xf32, #tpu.memory_space<vmem>>, vector<8x8x32xf32>
    tpu.vector_store %arg7[%c0_20, %c0_21, %c0_22], %36 {strides = array<i32>} : memref<8x8x32xf32, #tpu.memory_space<vmem>>, vector<8x8x32xf32>,
    return
  }
  func.func @transform_0(%arg0: i32) -> (i32, i32, i32) {
    %c0_i32 = arith.constant 0 : i32
    %c0_i32_0 = arith.constant 0 : i32
    %c0_i32_1 = arith.constant 0 : i32
    return %arg0, %c0_i32, %c0_i32_0 : i32, i32, i32
  }
  func.func @transform_1(%arg0: i32) -> (i32, i32, i32) {
    %c0_i32 = arith.constant 0 : i32
    %c0_i32_0 = arith.constant 0 : i32
    %c0_i32_1 = arith.constant 0 : i32
    return %arg0, %c0_i32, %c0_i32_0 : i32, i32, i32
  }
  func.func @transform_2(%arg0: i32) -> (i32, i32) {
    %c0_i32 = arith.constant 0 : i32
    %c0_i32_0 = arith.constant 0 : i32
    %c0_i32_1 = arith.constant 0 : i32
    return %c0_i32, %c0_i32_0 : i32, i32
  }
  func.func @transform_3(%arg0: i32) -> (i32, i32) {
    %c0_i32 = arith.constant 0 : i32
    %c0_i32_0 = arith.constant 0 : i32
    %c0_i32_1 = arith.constant 0 : i32
    return %c0_i32, %c0_i32_0 : i32, i32
  }
  func.func @transform_4(%arg0: i32) -> (i32, i32) {
    %c0_i32 = arith.constant 0 : i32
    %c0_i32_0 = arith.constant 0 : i32
    %c0_i32_1 = arith.constant 0 : i32
    return %c0_i32, %c0_i32_0 : i32, i32
  }
  func.func @transform_5(%arg0: i32) -> (i32, i32) {
    %c0_i32 = arith.constant 0 : i32
    %c0_i32_0 = arith.constant 0 : i32
    %c0_i32_1 = arith.constant 0 : i32
    return %c0_i32, %c0_i32_0 : i32, i32
  }
  func.func @transform_6(%arg0: i32) -> (i32, i32, i32) {
    %c0_i32 = arith.constant 0 : i32
    %c0_i32_0 = arith.constant 0 : i32
    %c0_i32_1 = arith.constant 0 : i32
    return %arg0, %c0_i32, %c0_i32_0 : i32, i32, i32
  }
}

</mosaic_0001>

<bundles_post_ra>
// kernel: tpu_custom_call.1
= control target key start
LH: loop header
LB: loop body
LE: loop exit
PB: predicated region body
PF: predicated region fallthrough
CT: control target
= control target key end

     0   :  { %11 = vsyncpa [#allocation3], 0  ;;  %s2464_s0 = inlined_call_operand.hbm [shape: f32[8,8,16], index: 0, kind: input, shape index: {}]   ;;  %s2465_s1 = inlined_call_operand.hbm [shape: s8[8,8,8], index: 1, kind: input, shape index: {}]   ;;  %s2466_s2 = inlined_call_operand.hbm [shape: f32[16,96], index: 2, kind: input, shape index: {}]   ;;  %s2467_s3 = inlined_call_operand.vmem [shape: f32[1,96], index: 3, kind: input, shape index: {}]   ;;  %s2468_s4 = inlined_call_operand.hbm [shape: f32[32,32], index: 4, kind: input, shape index: {}]   ;;  %s2469_s5 = inlined_call_operand.vmem [shape: f32[1,32], index: 5, kind: input, shape index: {}]   ;;  %s2470_s6 = inlined_call_operand.hbm [shape: f32[8,8,32], index: 6, kind: output, shape index: {}]  }
   0x1   :  { %12 = vsyncpa [#allocation6], 0 }
   0x2   :  { %13 = vsyncpa [#allocation9], 0 }
   0x3   :  { %14 = vsyncpa [#allocation4], 0  ;;  %s2155_s21 = smov [#allocation5]   ;;  %s2037_s25 = scalar_lea.hbm %s2465_s1, 256 }
   0x4   :  { %s32_s22 = sshll.u32 %s2155_s21, 4  ;;  %p2038_p0 = scmp.ne.s32.totalorder %s2465_s1, %s2037_s25  ;;  %s33_s22 = int_to_ptr.vmem [resolvable:$true] %s32_s22 }
   0x5   :  { %p2041_p1 = scmp.lt.u32.totalorder %s2037_s25, %s2465_s1 }
   0x7   :  { %p2043_p2 = pnand %p2041_p1, %p2038_p0 }
   0x9   :  { %2046 = shalt.err (!%p2043_p2)
}
   0xa   :  { %s2047_s30 = scalar_lea.vmem %s33_s22, 256  ;;  %p2052_p4 = scmp.lt.s32.totalorder %s33_s22, %s33_s22 }
   0xb   :  { %p2048_p3 = scmp.ne.s32.totalorder %s33_s22, %s2047_s30  ;;  %p2053_p5 = scmp.lt.s32.totalorder %s2047_s30, %s2047_s30 }
   0xd   :  { %p2054_p6 = por %p2053_p5, %p2052_p4 }
   0xf   :  { %p2055_p7 = pnand %p2054_p6, %p2048_p3 }
  0x11   :  { %2058 = shalt.err (!%p2055_p7)
}
  0x12   :  { %s2156_s7 = smov 32   ;;  %s2157_s8 = smov 2  }
  0x13   :  { %38 = dma.hbm_to_vmem [thread:$0]  %s2465_s1, 256, %s33_s22, [#allocation6], %s2156_s7, %s2156_s7, %s2157_s8  }
  0x14   :  { %s2158_s11 = smov [#allocation2]   ;;  %s2059_s15 = scalar_lea.hbm %s2464_s0, 1024 }
  0x15   :  { %s20_s12 = sshll.u32 %s2158_s11, 4  ;;  %p2060_p8 = scmp.ne.s32.totalorder %s2464_s0, %s2059_s15  ;;  %s21_s12 = int_to_ptr.vmem [resolvable:$true] %s20_s12 }
  0x16   :  { %p2063_p9 = scmp.lt.u32.totalorder %s2059_s15, %s2464_s0 }
  0x18   :  { %p2065_p10 = pnand %p2063_p9, %p2060_p8 }
  0x1a   :  { %2068 = shalt.err (!%p2065_p10)
}
  0x1b   :  { %s2069_s20 = scalar_lea.vmem %s21_s12, 1024  ;;  %p2074_p12 = scmp.lt.s32.totalorder %s21_s12, %s21_s12 }
  0x1c   :  { %p2070_p11 = scmp.ne.s32.totalorder %s21_s12, %s2069_s20  ;;  %p2075_p13 = scmp.lt.s32.totalorder %s2069_s20, %s2069_s20 }
  0x1e   :  { %p2076_p0 = por %p2075_p13, %p2074_p12 }
  0x20   :  { %p2077_p1 = pnand %p2076_p0, %p2070_p11 }
  0x22   :  { %2080 = shalt.err (!%p2077_p1)
}
  0x23   :  { %s2159_s1 = smov 128   ;;  %s2160_s21 = smov 8  }
  0x24   :  { %26 = dma.hbm_to_vmem [thread:$0]  %s2464_s0, 1024, %s21_s12, [#allocation3], %s2159_s1, %s2159_s1, %s2160_s21  }
  0x25   :  { %s2161_s24 = smov [#allocation7]   ;;  %s2162_s26 = smov [#allocation8]  }
  0x26   :  { %s44_s25 = sshll.u32 %s2161_s24, 4  ;;  %s58_s27 = sshll.u32 %s2162_s26, 4  ;;  %s45_s25 = int_to_ptr.vmem [resolvable:$true] %s44_s25  ;;  %s2230_s27 = int_to_ptr.vmem [resolvable:$true] %s58_s27 }
  0x27   :  { %s2081_s30 = scalar_lea.hbm %s2466_s2, 256 }
  0x28   :  { %p2082_p2 = scmp.ne.s32.totalorder %s2466_s2, %s2081_s30  ;;  %p2085_p3 = scmp.lt.u32.totalorder %s2081_s30, %s2466_s2 }
  0x2a   :  { %p2087_p4 = pnand %p2085_p3, %p2082_p2 }
  0x2c   :  { %2090 = shalt.err (!%p2087_p4)
}
  0x2d   :  { %s2091_s0 = scalar_lea.vmem %s45_s25, 256  ;;  %p2096_p6 = scmp.lt.s32.totalorder %s45_s25, %s45_s25 }
  0x2e   :  { %p2092_p5 = scmp.ne.s32.totalorder %s45_s25, %s2091_s0  ;;  %p2097_p7 = scmp.lt.s32.totalorder %s2091_s0, %s2091_s0 }
  0x30   :  { %p2098_p8 = por %p2097_p7, %p2096_p6 }
  0x32   :  { %p2099_p9 = pnand %p2098_p8, %p2092_p5 }
  0x34   :  { %2102 = shalt.err (!%p2099_p9)
}
  0x35   :  { %50 = dma.hbm_to_vmem [thread:$0]  %s2466_s2, 256, %s45_s25, [#allocation6], %s2159_s1, %s2159_s1, %s2160_s21  }
  0x36   :  { %s2103_s15 = scalar_lea.hbm %s2468_s4, 512 }
  0x37   :  { %p2104_p10 = scmp.ne.s32.totalorder %s2468_s4, %s2103_s15  ;;  %p2107_p11 = scmp.lt.u32.totalorder %s2103_s15, %s2468_s4 }
  0x39   :  { %p2109_p12 = pnand %p2107_p11, %p2104_p10 }
  0x3b   :  { %2112 = shalt.err (!%p2109_p12)
}
  0x3c   :  { %s2113_s20 = scalar_lea.vmem %s2230_s27, 512  ;;  %p2118_p0 = scmp.lt.s32.totalorder %s2230_s27, %s2230_s27 }
  0x3d   :  { %p2114_p13 = scmp.ne.s32.totalorder %s2230_s27, %s2113_s20  ;;  %p2119_p1 = scmp.lt.s32.totalorder %s2113_s20, %s2113_s20 }
  0x3f   :  { %p2120_p2 = por %p2119_p1, %p2118_p0 }
  0x41   :  { %p2121_p3 = pnand %p2120_p2, %p2114_p13 }
  0x43   :  { %2124 = shalt.err (!%p2121_p3)
}
  0x44   :  { %64 = dma.hbm_to_vmem [thread:$0]  %s2468_s4, 512, %s2230_s27, [#allocation9], %s2159_s1, %s2159_s1, %s2160_s21  }
  0x45   :  { %2147 = dma.done.wait [#allocation3], 1024  }
  0x46   :  { %2148 = vsyncadd [#allocation3], 4294966272 }
  0x47   :  { %2149 = dma.done.wait [#allocation6], 512  }
  0x48   :  { %2150 = vsyncadd [#allocation6], 4294966784 }
  0x49   :  { %2151 = dma.done.wait [#allocation9], 512  }
  0x4a   :  { %2152 = vsyncadd [#allocation9], 4294966784  ;;  %vm96_vm0 = vcmask 130048   ;;  %v87_v0 = vld [vmem:[#allocation7] sm:$0xff]  ;;  %v88_v1 = vld [vmem:[#allocation7 + $0x8] sm:$0xff]  ;;  %v2163_v11 = vmov 0.0  }
  0x4b   :  { %v79_v2 = vld [vmem:[#allocation2] sm:$0xff]  ;;  %v1975_v3 = vpack.c.bf16 %v88_v1, %v87_v0  ;;  %v81_v4 = vld [vmem:[#allocation2 + $0x10] sm:$0xff]  ;;  %v80_v5 = vld [vmem:[#allocation2 + $0x8] sm:$0xff]  ;;  %vm2164_vm1 = vmmov 0   ;;  %s2165_s24 = smov 96   ;;  %vm229_vm2 = vcmask 261120  }
  0x4c   :  { %1863 = vmatprep.mubr.msk.f32.mxu0 %vm96_vm0, %v79_v2  ;;  %1866 = vmatprep.mubr.msk.f32.mxu1 %vm96_vm0, %v81_v4  ;;  %v82_v6 = vld [vmem:[#allocation2 + $0x18] sm:$0xff]  ;;  %v83_v7 = vld [vmem:[#allocation2 + $0x20] sm:$0xff]  ;;  %v84_v8 = vld [vmem:[#allocation2 + $0x28] sm:$0xff]  ;;  %vm883_vm4 = vcmask 64512  }
  0x4d   :  { %1976 = vmatprep.subr.bf16.mxu0 %v1975_v3  ;;  %1987 = vmatprep.subr.bf16.mxu1 %v1975_v3  ;;  %v85_v9 = vld [vmem:[#allocation2 + $0x30] sm:$0xff]  ;;  %v86_v10 = vld [vmem:[#allocation2 + $0x38] sm:$0xff]  ;;  %v1747_v12 = vld [vmem:[%s2467_s3] ss:$0 sm:$0xff]  ;;  %s2166_s3 = smov 64  }
  0x4e   :  { %1978 = vmatpush3.bf16.msra.mxu0 %v1975_v3  ;;  %1988 = vmatpush3.bf16.msra.mxu1 %v1975_v3  ;;  %v1790_v37 = vld [vmem:[#allocation5] sm:$0xff]   ;;  %v1990_v41 = vld [vmem:[#allocation5 + $0x8] sm:$0xff]  }
  0x4f   :  { %1875 = vmatprep.subr.mxu1 %v2163_v11  ;;  %1895 = vmatprep.subr.mxu0 %v2163_v11  ;;  %v1791_v38 = vunpack.c.0.s8 %v1790_v37  ;;  %v1792_v40 = vunpack.c.1.s8 %v1790_v37  ;;  %v1795_v43 = vunpack.c.2.s8 %v1790_v37  ;;  %v1799_v44 = vunpack.c.0.s8 %v1990_v41 }
  0x50   :  { %v1796_v46 = vunpack.c.3.s8 %v1790_v37  ;;  %v1803_v47 = vunpack.c.2.s8 %v1990_v41  ;;  %v1800_v59 = vunpack.c.1.s8 %v1990_v41 }
  0x51   :  { %1864 = vmatmul.mubr.msk.f32.vlgmr.msra.gmra.mrb[0].mxu0 %vm96_vm0, %v80_v5  ;;  %1867 = vmatmul.mubr.msk.f32.vlgmr.msra.gmra.mrb[0].mxu1 %vm96_vm0, %v82_v6  ;;  %v859_v39 = vcvt.s32.f32 %v1791_v38  ;;  %v860_v42 = vcvt.s32.f32 %v1792_v40  ;;  %v861_v51 = vcvt.s32.f32 %v1795_v43  ;;  %v863_v52 = vcvt.s32.f32 %v1799_v44 }
  0x52   :  { %1869 = vmatprep.mubr.msk.f32.mxu1 %vm96_vm0, %v83_v7  ;;  %1897 = vmatprep.mubr.msk.f32.mxu0 %vm2164_vm1, %v2163_v11  ;;  %v862_v54 = vcvt.s32.f32 %v1796_v46  ;;  %v865_v55 = vcvt.s32.f32 %v1803_v47  ;;  %v864_v4 = vcvt.s32.f32 %v1800_v59  ;;  %v1804_v5 = vunpack.c.3.s8 %v1990_v41 }
  0x53   :  { %vm867_vm3 = vcmp.gt.f32.partialorder %v859_v39, 0.0  ;;  %vm868_vm5 = vcmp.gt.f32.partialorder %v860_v42, 0.0  ;;  %vm869_vm6 = vcmp.gt.f32.partialorder %v861_v51, 0.0  ;;  %vm871_vm7 = vcmp.gt.f32.partialorder %v863_v52, 0.0 }
  0x54   :  { %vm870_vm8 = vcmp.gt.f32.partialorder %v862_v54, 0.0  ;;  %vm873_vm9 = vcmp.gt.f32.partialorder %v865_v55, 0.0  ;;  %vm872_vm10 = vcmp.gt.f32.partialorder %v864_v4, 0.0 }
  0x55   :  { %1870 = vmatmul.mubr.msk.f32.gmra.mrb[2].mxu1 %vm96_vm0, %v84_v8 }
  0x56   :  { %1872 = vmatprep.mubr.msk.f32.mxu1 %vm96_vm0, %v85_v9 }
  0x59   :  { %1873 = vmatmul.mubr.msk.f32.gmra.mrb[4].mxu1 %vm96_vm0, %v86_v10 }
  0x5a   :  { %1877 = vmatprep.mubr.msk.f32.mxu1 %vm2164_vm1, %v2163_v11 }
 0x124   :  { %v1865_v13 = vpop.f32.mrb[0].mxu0  ;;  %v1868_v14 = vpop.f32.mrb[0].mxu1 }
 0x125   :  { %v187_v15 = vpop.f32.mrb[1].mxu0  ;;  %v197_v16 = vpop.f32.mrb[1].mxu1  ;;  %v2289_v19 = vadd.f32 %v1868_v14, %v1747_v12  ;;  %v2292_v22 = vadd.f32 %v1865_v13, %v1747_v12 }
 0x126   :  { %v2284_v17 = vadd.f32 %v1747_v12, %v187_v15  ;;  %v2286_v18 = vadd.f32 %v1747_v12, %v197_v16  ;;  %v866_v15 = vcvt.s32.f32 %v1804_v5 }
 0x128   :  { %227 = vrot.lane.b32.xlu0 %v2284_v17, %s2165_s24  ;;  %v1871_v20 = vpop.f32.mrb[2].mxu1  ;;  %382 = vrot.lane.b32.xlu1 %v2286_v18, %s2165_s24  ;;  %vm874_vm11 = vcmp.gt.f32.partialorder %v866_v15, 0.0 }
 0x129   :  { %v207_v21 = vpop.f32.mrb[3].mxu1  ;;  %v2294_v23 = vadd.f32 %v1871_v20, %v1747_v12 }
 0x12a   :  { %v2297_v24 = vadd.f32 %v1747_v12, %v207_v21 }
 0x12c   :  { %305 = vrot.lane.b32.xlu0 %v2292_v22, %s2165_s24  ;;  %v1874_v25 = vpop.f32.mrb[4].mxu1  ;;  %459 = vrot.lane.b32.xlu1 %v2289_v19, %s2165_s24 }
 0x12d   :  { %v217_v26 = vpop.f32.mrb[5].mxu1  ;;  %v2300_v27 = vadd.f32 %v1874_v25, %v1747_v12 }
 0x12e   :  { %v2303_v28 = vadd.f32 %v1747_v12, %v217_v26 }
 0x130   :  { %536 = vrot.lane.b32.xlu0 %v2297_v24, %s2165_s24  ;;  %613 = vrot.lane.b32.xlu1 %v2294_v23, %s2165_s24 }
 0x134   :  { %690 = vrot.lane.b32.xlu0 %v2303_v28, %s2165_s24  ;;  %767 = vrot.lane.b32.xlu1 %v2300_v27, %s2165_s24 }
 0x19a   :  { %v228_v29 = vpop.permute.xlu0 %227  ;;  %v383_v30 = vpop.permute.xlu1 %382 }
 0x19b   :  { %1876 = vmatpush3.xpose.msk.msra.mxu1 %vm229_vm2, %v228_v29 }
 0x19c   :  { %1880 = vmatprep.subr.mxu1 %v2163_v11 }
 0x19e   :  { %1878 = vmatmul.mubr.msk.f32.vlgmr.msra.gmra.mrb[6].mxu1 %vm229_vm2, %v2284_v17  ;;  %v306_v31 = vpop.permute.xlu0 %305  ;;  %v460_v33 = vpop.permute.xlu1 %459 }
 0x19f   :  { %1881 = vmatpush3.xpose.msk.msra.mxu1 %vm229_vm2, %v306_v31  ;;  %1882 = vmatprep.mubr.msk.f32.mxu1 %vm2164_vm1, %v2163_v11 }
 0x1a0   :  { %1885 = vmatprep.subr.mxu1 %v2163_v11 }
 0x1a2   :  { %1883 = vmatmul.mubr.msk.f32.vlgmr.msra.gmra.mrb[8].mxu1 %vm229_vm2, %v2292_v22  ;;  %v537_v32 = vpop.permute.xlu0 %536  ;;  %v614_v35 = vpop.permute.xlu1 %613 }
 0x1a3   :  { %1886 = vmatpush3.xpose.msk.msra.mxu1 %vm229_vm2, %v383_v30  ;;  %1896 = vmatpush3.xpose.msk.msra.mxu0 %vm229_vm2, %v537_v32 }
 0x1a4   :  { %1887 = vmatprep.mubr.msk.f32.mxu1 %vm2164_vm1, %v2163_v11  ;;  %1890 = vmatprep.subr.mxu1 %v2163_v11 }
 0x1a5   :  { %1905 = vmatprep.subr.mxu0 %v2163_v11 }
 0x1a6   :  { %1888 = vmatmul.mubr.msk.f32.vlgmr.msra.gmra.mrb[10].mxu1 %vm229_vm2, %v2286_v18  ;;  %1898 = vmatmul.mubr.msk.f32.vlgmr.msra.gmra.mrb[2].mxu0 %vm229_vm2, %v2297_v24  ;;  %v691_v34 = vpop.permute.xlu0 %690  ;;  %v768_v36 = vpop.permute.xlu1 %767 }
 0x1a7   :  { %1891 = vmatpush3.xpose.msk.msra.mxu1 %vm229_vm2, %v460_v33  ;;  %1906 = vmatpush3.xpose.msk.msra.mxu0 %vm229_vm2, %v691_v34 }
 0x1a8   :  { %1892 = vmatprep.mubr.msk.f32.mxu1 %vm2164_vm1, %v2163_v11  ;;  %1907 = vmatprep.mubr.msk.f32.mxu0 %vm2164_vm1, %v2163_v11 }
 0x1a9   :  { %1900 = vmatprep.subr.mxu1 %v2163_v11  ;;  %1915 = vmatprep.subr.mxu0 %v2163_v11 }
 0x1aa   :  { %1893 = vmatmul.mubr.msk.f32.vlgmr.msra.gmra.mrb[12].mxu1 %vm229_vm2, %v2289_v19  ;;  %1908 = vmatmul.mubr.msk.f32.vlgmr.msra.gmra.mrb[4].mxu0 %vm229_vm2, %v2303_v28 }
 0x1ab   :  { %1901 = vmatpush3.xpose.msk.msra.mxu1 %vm229_vm2, %v614_v35  ;;  %1902 = vmatprep.mubr.msk.f32.mxu1 %vm2164_vm1, %v2163_v11 }
 0x1ac   :  { %1910 = vmatprep.subr.mxu1 %v2163_v11  ;;  %1917 = vmatprep.mubr.msk.f32.mxu0 %vm2164_vm1, %v2163_v11 }
 0x1ae   :  { %1903 = vmatmul.mubr.msk.f32.vlgmr.msra.gmra.mrb[14].mxu1 %vm229_vm2, %v2294_v23 }
 0x1af   :  { %1911 = vmatpush3.xpose.msk.msra.mxu1 %vm229_vm2, %v768_v36  ;;  %1912 = vmatprep.mubr.msk.f32.mxu1 %vm2164_vm1, %v2163_v11 }
 0x1b0   :  { %1920 = vmatprep.subr.mxu1 %v2163_v11 }
 0x1b2   :  { %1913 = vmatmul.mubr.msk.f32.vlgmr.msra.gmra.mrb[16].mxu1 %vm229_vm2, %v2300_v27 }
 0x1b3   :  { %1922 = vmatprep.mubr.msk.f32.mxu1 %vm2164_vm1, %v2163_v11 }
 0x271   :  { %v300_v45 = vpop.f32.mrb[6].mxu1 }
 0x272   :  { %v2356_v48 = vsel %vm867_vm3, -1e+30, %v300_v45  ;;  %v1879_v49 = vpop.f32.mrb[7].mxu1 }
 0x273   :  { %v884_v50 = vsel %vm883_vm4, %v2356_v48, -inf }
 0x274   :  { %885 = vmax.xlane.f32.xlu0 %v884_v50 }
 0x275   :  { %v377_v53 = vpop.f32.mrb[8].mxu1 }
 0x276   :  { %v876_v56 = vsel %vm868_vm5, -1e+30, %v377_v53  ;;  %v1884_v57 = vpop.f32.mrb[9].mxu1 }
 0x277   :  { %v887_v58 = vsel %vm883_vm4, %v876_v56, -inf }
 0x278   :  { %888 = vmax.xlane.f32.xlu1 %v887_v58 }
 0x279   :  { %v454_v60 = vpop.f32.mrb[10].mxu1  ;;  %v608_v61 = vpop.f32.mrb[2].mxu0 }
 0x27a   :  { %v877_v62 = vsel %vm869_vm6, -1e+30, %v454_v60  ;;  %v879_v63 = vsel %vm871_vm7, -1e+30, %v608_v61  ;;  %v1889_v0 = vpop.f32.mrb[11].mxu1  ;;  %v1899_v1 = vpop.f32.mrb[3].mxu0 }
 0x27b   :  { %v890_v2 = vsel %vm883_vm4, %v877_v62, -inf  ;;  %v896_v3 = vsel %vm883_vm4, %v879_v63, -inf }
 0x27c   :  { %891 = vmax.xlane.f32.xlu0 %v890_v2  ;;  %897 = vmax.xlane.f32.xlu1 %v896_v3 }
 0x27d   :  { %v531_v6 = vpop.f32.mrb[12].mxu1  ;;  %v762_v7 = vpop.f32.mrb[4].mxu0 }
 0x27e   :  { %v878_v8 = vsel %vm870_vm8, -1e+30, %v531_v6  ;;  %v881_v9 = vsel %vm873_vm9, -1e+30, %v762_v7  ;;  %v1894_v10 = vpop.f32.mrb[13].mxu1  ;;  %v1909_v12 = vpop.f32.mrb[5].mxu0 }
 0x27f   :  { %v893_v13 = vsel %vm883_vm4, %v878_v8, -inf  ;;  %v902_v14 = vsel %vm883_vm4, %v881_v9, -inf }
 0x280   :  { %894 = vmax.xlane.f32.xlu0 %v893_v13  ;;  %903 = vmax.xlane.f32.xlu1 %v902_v14 }
 0x281   :  { %v685_v16 = vpop.f32.mrb[14].mxu1 }
 0x282   :  { %v880_v20 = vsel %vm872_vm10, -1e+30, %v685_v16  ;;  %v1904_v21 = vpop.f32.mrb[15].mxu1 }
 0x283   :  { %v899_v25 = vsel %vm883_vm4, %v880_v20, -inf }
 0x284   :  { %900 = vmax.xlane.f32.xlu0 %v899_v25 }
 0x285   :  { %v839_v26 = vpop.f32.mrb[16].mxu1 }
 0x286   :  { %v882_v29 = vsel %vm874_vm11, -1e+30, %v839_v26  ;;  %v1914_v30 = vpop.f32.mrb[17].mxu1 }
 0x287   :  { %v905_v31 = vsel %vm883_vm4, %v882_v29, -inf }
 0x288   :  { %906 = vmax.xlane.f32.xlu0 %v905_v31 }
 0x291   :  { %972 = vrot.lane.b32.xlu1 %v2284_v17, %s2166_s3 }
 0x295   :  { %1124 = vrot.lane.b32.xlu1 %v2286_v18, %s2166_s3 }
 0x299   :  { %1200 = vrot.lane.b32.xlu1 %v2289_v19, %s2166_s3 }
 0x29d   :  { %1352 = vrot.lane.b32.xlu1 %v2294_v23, %s2166_s3 }
 0x29e   :  { %1048 = vrot.lane.b32.xlu0 %v2292_v22, %s2166_s3 }
 0x2a2   :  { %1276 = vrot.lane.b32.xlu0 %v2297_v24, %s2166_s3 }
 0x301   :  { %v886_v32 = vpop.xlane.xlu0 %885 }
 0x302   :  { %v908_v33 = vsub.f32 %v2356_v48, %v886_v32  ;;  %v1580_v32 = vld [vmem:[#allocation8] sm:$0xff] }
 0x304   :  { %v916_v34 = vmul.f32 1.442695, %v908_v33  ;;  %v1581_v33 = vld [vmem:[#allocation8 + $0x8] sm:$0xff] }
 0x305   :  { %v889_v17 = vpop.xlane.xlu1 %888 }
 0x306   :  { %2005 = vpow2.f32 %v916_v34  ;;  %v909_v35 = vsub.f32 %v876_v56, %v889_v17 }
 0x308   :  { %v918_v18 = vmul.f32 1.442695, %v909_v35 }
 0x309   :  { %v898_v36 = vpop.xlane.xlu1 %897  ;;  %v892_v37 = vpop.xlane.xlu0 %891 }
 0x30a   :  { %2007 = vpow2.f32 %v918_v18  ;;  %v912_v19 = vsub.f32 %v879_v63, %v898_v36  ;;  %v910_v38 = vsub.f32 %v877_v62, %v892_v37  ;;  %v1979_v36 = vpack.c.bf16 %v1581_v33, %v1580_v32 }
 0x30c   :  { %v924_v23 = vmul.f32 1.442695, %v912_v19  ;;  %v920_v39 = vmul.f32 1.442695, %v910_v38 }
 0x30d   :  { %v904_v40 = vpop.xlane.xlu1 %903  ;;  %v895_v22 = vpop.xlane.xlu0 %894 }
 0x30e   :  { %2009 = vpow2.f32 %v924_v23  ;;  %v914_v41 = vsub.f32 %v881_v9, %v904_v40  ;;  %v911_v24 = vsub.f32 %v878_v8, %v895_v22  ;;  %v1582_v40 = vld [vmem:[#allocation8 + $0x10] sm:$0xff]  ;;  %v1583_v22 = vld [vmem:[#allocation8 + $0x18] sm:$0xff] }
 0x30f   :  { %2011 = vpow2.f32 %v920_v39 }
 0x310   :  { %v2006_v42 = vpop.eup %2005  ;;  %v928_v43 = vmul.f32 1.442695, %v914_v41  ;;  %v922_v44 = vmul.f32 1.442695, %v911_v24  ;;  %v1983_v41 = vpack.c.bf16 %v1583_v22, %v1582_v40 }
 0x311   :  { %v973_v45 = vpop.permute.xlu1 %972  ;;  %v901_v46 = vpop.xlane.xlu0 %900  ;;  %v932_v47 = vsel %vm883_vm4, %v2006_v42, 0.0 }
 0x312   :  { %v913_v48 = vsub.f32 %v880_v20, %v901_v46  ;;  %1916 = vmatpush3.msra.mxu0 %v973_v45  ;;  %933 = vadd.xlane.f32.xlu1 %v932_v47  ;;  %2013 = vpow2.f32 %v922_v44 }
 0x313   :  { %1925 = vmatprep.subr.mxu0 %v2163_v11  ;;  %2015 = vpow2.f32 %v928_v43 }
 0x314   :  { %v2008_v49 = vpop.eup %2007  ;;  %v926_v50 = vmul.f32 1.442695, %v913_v48 }
 0x315   :  { %v907_v51 = vpop.xlane.xlu0 %906  ;;  %v935_v52 = vsel %vm883_vm4, %v2008_v49, 0.0  ;;  %v1125_v4 = vpop.permute.xlu1 %1124 }
 0x316   :  { %2017 = vpow2.f32 %v926_v50  ;;  %v915_v53 = vsub.f32 %v882_v29, %v907_v51  ;;  %936 = vadd.xlane.f32.xlu0 %v935_v52 }
 0x318   :  { %v2383_v54 = vpop.eup %2009  ;;  %v930_v55 = vmul.f32 1.442695, %v915_v53 }
 0x319   :  { %v1049_v56 = vpop.permute.xlu0 %1048  ;;  %v944_v57 = vsel %vm883_vm4, %v2383_v54, 0.0  ;;  %v2012_v58 = vpop.eup %2011 }
 0x31a   :  { %2019 = vpow2.f32 %v930_v55  ;;  %945 = vadd.xlane.f32.xlu1 %v944_v57  ;;  %1921 = vmatpush3.msra.mxu1 %v1049_v56  ;;  %v938_v60 = vsel %vm883_vm4, %v2012_v58, 0.0  ;;  %v1201_v5 = vpop.permute.xlu1 %1200  ;;  %v1780_v56 = vld [vmem:[%s2469_s5] ss:$0 sm:$0xff]  ;;  %s2167_s5 = smov [#allocation10]  }
 0x31b   :  { %1930 = vmatprep.subr.mxu1 %v2163_v11  ;;  %s1733_s27 = sshll.u32 %s2167_s5, 4  ;;  %s1734_s27 = int_to_ptr.vmem [resolvable:$true] %s1733_s27 }
 0x31c   :  { %v2014_v59 = vpop.eup %2013  ;;  %s2125_s28 = scalar_lea.vmem %s1734_s27, 1024  ;;  %p2130_p5 = scmp.lt.s32.totalorder %s1734_s27, %s1734_s27 }
 0x31d   :  { %v2389_v61 = vpop.eup %2015  ;;  %v941_v62 = vsel %vm883_vm4, %v2014_v59, 0.0  ;;  %v1277_v7 = vpop.permute.xlu0 %1276  ;;  %p2126_p4 = scmp.ne.s32.totalorder %s1734_s27, %s2125_s28  ;;  %p2131_p6 = scmp.lt.s32.totalorder %s2125_s28, %s2125_s28 }
 0x31e   :  { %939 = vadd.xlane.f32.xlu1 %v938_v60  ;;  %942 = vadd.xlane.f32.xlu0 %v941_v62  ;;  %v950_v0 = vsel %vm883_vm4, %v2389_v61, 0.0  ;;  %v1353_v6 = vpop.permute.xlu1 %1352 }
 0x31f   :  { %p2132_p7 = por %p2131_p6, %p2130_p5 }
 0x320   :  { %v2018_v63 = vpop.eup %2017 }
 0x321   :  { %v947_v1 = vsel %vm883_vm4, %v2018_v63, 0.0  ;;  %p2133_p8 = pnand %p2132_p7, %p2126_p4 }
 0x322   :  { %951 = vadd.xlane.f32.xlu1 %v950_v0  ;;  %948 = vadd.xlane.f32.xlu0 %v947_v1 }
 0x324   :  { %v2395_v2 = vpop.eup %2019 }
 0x325   :  { %v953_v3 = vsel %vm883_vm4, %v2395_v2, 0.0 }
 0x326   :  { %954 = vadd.xlane.f32.xlu0 %v953_v3 }
 0x333   :  { %1504 = vrot.lane.b32.xlu1 %v2300_v27, %s2166_s3 }
 0x33c   :  { %1428 = vrot.lane.b32.xlu0 %v2303_v28, %s2166_s3 }
 0x39f   :  { %v934_v8 = vpop.xlane.xlu1 %933 }
 0x3a0   :  { %2021 = vrcp.f32 %v934_v8 }
 0x3a3   :  { %v937_v9 = vpop.xlane.xlu0 %936 }
 0x3a4   :  { %2023 = vrcp.f32 %v937_v9 }
 0x3a7   :  { %v946_v10 = vpop.xlane.xlu1 %945 }
 0x3aa   :  { %v2022_v12 = vpop.eup %2021 }
 0x3ab   :  { %v957_v13 = vmul.f32 %v2022_v12, %v2006_v42  ;;  %v940_v14 = vpop.xlane.xlu1 %939  ;;  %v943_v15 = vpop.xlane.xlu0 %942 }
 0x3ac   :  { %2025 = vrcp.f32 %v940_v14 }
 0x3ad   :  { %2027 = vrcp.f32 %v943_v15  ;;  %1918 = vmatmul.mubr.msk.f32.vlgmr.msra.gmra.mrb[6].mxu0 %vm883_vm4, %v957_v13 }
 0x3ae   :  { %v2024_v27 = vpop.eup %2023  ;;  %2029 = vrcp.f32 %v946_v10  ;;  %1926 = vmatpush3.msra.mxu0 %v1125_v4  ;;  %1927 = vmatprep.mubr.msk.f32.mxu0 %vm2164_vm1, %v2163_v11 }
 0x3af   :  { %v959_v28 = vmul.f32 %v2024_v27, %v2008_v49  ;;  %v952_v16 = vpop.xlane.xlu1 %951  ;;  %1935 = vmatprep.subr.mxu0 %v2163_v11  ;;  %v949_v20 = vpop.xlane.xlu0 %948 }
 0x3b0   :  { %2031 = vrcp.f32 %v949_v20 }
 0x3b1   :  { %1923 = vmatmul.mubr.msk.f32.vlgmr.msra.gmra.mrb[18].mxu1 %vm883_vm4, %v959_v28  ;;  %2033 = vrcp.f32 %v952_v16 }
 0x3b2   :  { %1931 = vmatpush3.msra.mxu1 %v1201_v5  ;;  %1932 = vmatprep.mubr.msk.f32.mxu1 %vm2164_vm1, %v2163_v11 }
 0x3b3   :  { %1940 = vmatprep.subr.mxu1 %v2163_v11  ;;  %v955_v21 = vpop.xlane.xlu0 %954  ;;  %v1505_v19 = vpop.permute.xlu1 %1504 }
 0x3b4   :  { %2035 = vrcp.f32 %v955_v21 }
 0x3b6   :  { %v2026_v25 = vpop.eup %2025 }
 0x3b7   :  { %v2028_v26 = vpop.eup %2027  ;;  %v961_v29 = vmul.f32 %v2026_v25, %v2012_v58  ;;  %v1429_v37 = vpop.permute.xlu0 %1428 }
 0x3b8   :  { %v2030_v30 = vpop.eup %2029  ;;  %v963_v31 = vmul.f32 %v2028_v26, %v2014_v59 }
 0x3b9   :  { %1928 = vmatmul.mubr.msk.f32.vlgmr.msra.gmra.mrb[8].mxu0 %vm883_vm4, %v961_v29  ;;  %v965_v17 = vmul.f32 %v2030_v30, %v2383_v54 }
 0x3ba   :  { %1933 = vmatmul.mubr.msk.f32.vlgmr.msra.gmra.mrb[20].mxu1 %vm883_vm4, %v963_v31  ;;  %1936 = vmatpush3.msra.mxu0 %v1277_v7  ;;  %v2032_v34 = vpop.eup %2031 }
 0x3bb   :  { %1941 = vmatpush3.msra.mxu1 %v1353_v6  ;;  %1937 = vmatprep.mubr.msk.f32.mxu0 %vm2164_vm1, %v2163_v11  ;;  %v2034_v35 = vpop.eup %2033  ;;  %v967_v18 = vmul.f32 %v2032_v34, %v2018_v63 }
 0x3bc   :  { %1942 = vmatprep.mubr.msk.f32.mxu1 %vm2164_vm1, %v2163_v11  ;;  %1945 = vmatprep.subr.mxu0 %v2163_v11  ;;  %v969_v23 = vmul.f32 %v2034_v35, %v2389_v61 }
 0x3bd   :  { %1950 = vmatprep.subr.mxu1 %v2163_v11  ;;  %1938 = vmatmul.mubr.msk.f32.vlgmr.msra.gmra.mrb[10].mxu0 %vm883_vm4, %v965_v17 }
 0x3be   :  { %1943 = vmatmul.mubr.msk.f32.vlgmr.msra.gmra.mrb[22].mxu1 %vm883_vm4, %v967_v18  ;;  %1946 = vmatpush3.msra.mxu0 %v1429_v37  ;;  %v2036_v38 = vpop.eup %2035 }
 0x3bf   :  { %1951 = vmatpush3.msra.mxu1 %v1505_v19  ;;  %1947 = vmatprep.mubr.msk.f32.mxu0 %vm2164_vm1, %v2163_v11  ;;  %v971_v39 = vmul.f32 %v2036_v38, %v2395_v2 }
 0x3c0   :  { %1952 = vmatprep.mubr.msk.f32.mxu1 %vm2164_vm1, %v2163_v11  ;;  %1980 = vmatprep.subr.bf16.mxu0 %v1979_v36 }
 0x3c1   :  { %1948 = vmatmul.mubr.msk.f32.vlgmr.msra.gmra.mrb[12].mxu0 %vm883_vm4, %v969_v23 }
 0x3c2   :  { %1953 = vmatmul.mubr.msk.f32.vlgmr.msra.gmra.mrb[24].mxu1 %vm883_vm4, %v971_v39  ;;  %1982 = vmatpush3.bf16.msra.mxu0 %v1979_v36 }
 0x3c3   :  { %1984 = vmatprep.subr.bf16.mxu0 %v1983_v41 }
 0x3c6   :  { %1986 = vmatpush3.bf16.msra.mxu0 %v1983_v41 }
 0x480   :  { %v1044_v24 = vpop.f32.mrb[6].mxu0 }
 0x481   :  { %v1919_v42 = vpop.f32.mrb[7].mxu0  ;;  %1963 = vmatprep.mubr.msk.f32.mxu0 %vm229_vm2, %v1044_v24 }
 0x484   :  { %v1120_v43 = vpop.f32.mrb[18].mxu1 }
 0x485   :  { %v1924_v44 = vpop.f32.mrb[19].mxu1  ;;  %1964 = vmatmul.mubr.msk.f32.vlgmr.msra.gmra.mrb[14].mxu0 %vm229_vm2, %v1120_v43 }
 0x48c   :  { %v1196_v11 = vpop.f32.mrb[8].mxu0 }
 0x48d   :  { %v1272_v45 = vpop.f32.mrb[20].mxu1  ;;  %v1929_v46 = vpop.f32.mrb[9].mxu0  ;;  %1966 = vmatprep.mubr.msk.f32.mxu0 %vm229_vm2, %v1196_v11 }
 0x48e   :  { %v1934_v47 = vpop.f32.mrb[21].mxu1  ;;  %1967 = vmatmul.mubr.msk.f32.gmra.mrb[16].mxu0 %vm229_vm2, %v1272_v45 }
 0x490   :  { %v1348_v48 = vpop.f32.mrb[10].mxu0 }
 0x491   :  { %v1424_v49 = vpop.f32.mrb[22].mxu1  ;;  %v1939_v50 = vpop.f32.mrb[11].mxu0  ;;  %1969 = vmatprep.mubr.msk.f32.mxu0 %vm229_vm2, %v1348_v48 }
 0x492   :  { %v1944_v51 = vpop.f32.mrb[23].mxu1  ;;  %1970 = vmatmul.mubr.msk.f32.gmra.mrb[18].mxu0 %vm229_vm2, %v1424_v49 }
 0x494   :  { %v1500_v52 = vpop.f32.mrb[12].mxu0 }
 0x495   :  { %v1576_v53 = vpop.f32.mrb[24].mxu1  ;;  %v1949_v54 = vpop.f32.mrb[13].mxu0  ;;  %1972 = vmatprep.mubr.msk.f32.mxu0 %vm229_vm2, %v1500_v52 }
 0x496   :  { %v1954_v55 = vpop.f32.mrb[25].mxu1  ;;  %1973 = vmatmul.mubr.msk.f32.gmra.mrb[20].mxu0 %vm229_vm2, %v1576_v53 }
 0x558   :  { %v1965_v57 = vpop.f32.mrb[14].mxu0 }
 0x559   :  { %v1687_v58 = vadd.f32 %v1965_v57, %v1780_v56  ;;  %v1681_v59 = vpop.f32.mrb[15].mxu0 }
 0x55a   :  { %v1682_v60 = vadd.f32 %v1780_v56, %v1681_v59 }
 0x55b   :  { %1721 = vst.msk [vmem:[#allocation10 + $0x8] sm:$0xff] %vm229_vm2, %v1687_v58 }
 0x55c   :  { %1720 = vst.msk [vmem:[#allocation10] sm:$0xff] %vm229_vm2, %v1682_v60 }
 0x561   :  { %v1968_v61 = vpop.f32.mrb[16].mxu0 }
 0x562   :  { %v1697_v62 = vadd.f32 %v1968_v61, %v1780_v56  ;;  %v1691_v63 = vpop.f32.mrb[17].mxu0 }
 0x563   :  { %v1692_v0 = vadd.f32 %v1780_v56, %v1691_v63 }
 0x564   :  { %1723 = vst.msk [vmem:[#allocation10 + $0x18] sm:$0xff] %vm229_vm2, %v1697_v62 }
 0x565   :  { %1722 = vst.msk [vmem:[#allocation10 + $0x10] sm:$0xff] %vm229_vm2, %v1692_v0  ;;  %v1971_v1 = vpop.f32.mrb[18].mxu0 }
 0x566   :  { %v1707_v2 = vadd.f32 %v1971_v1, %v1780_v56  ;;  %v1701_v3 = vpop.f32.mrb[19].mxu0 }
 0x567   :  { %v1702_v4 = vadd.f32 %v1780_v56, %v1701_v3 }
 0x568   :  { %1725 = vst.msk [vmem:[#allocation10 + $0x28] sm:$0xff] %vm229_vm2, %v1707_v2 }
 0x569   :  { %1724 = vst.msk [vmem:[#allocation10 + $0x20] sm:$0xff] %vm229_vm2, %v1702_v4  ;;  %v1974_v5 = vpop.f32.mrb[20].mxu0 }
 0x56a   :  { %v1717_v6 = vadd.f32 %v1974_v5, %v1780_v56  ;;  %v1711_v7 = vpop.f32.mrb[21].mxu0 }
 0x56b   :  { %v1712_v8 = vadd.f32 %v1780_v56, %v1711_v7 }
 0x56c   :  { %1727 = vst.msk [vmem:[#allocation10 + $0x38] sm:$0xff] %vm229_vm2, %v1717_v6 }
 0x56d   :  { %1726 = vst.msk [vmem:[#allocation10 + $0x30] sm:$0xff] %vm229_vm2, %v1712_v8 }
 0x56e   :  { %2136 = shalt.err (!%p2133_p8)
}
 0x56f   :  { %s2137_s7 = scalar_lea.hbm %s2470_s6, 1024 }
 0x570   :  { %p2138_p9 = scmp.ne.s32.totalorder %s2470_s6, %s2137_s7  ;;  %p2141_p10 = scmp.lt.u32.totalorder %s2137_s7, %s2470_s6 }
 0x572   :  { %p2143_p11 = pnand %p2141_p10, %p2138_p9 }
 0x574   :  { %2146 = shalt.err (!%p2143_p11)
}
 0x575   :  { %1739 = dma.vmem_to_hbm [thread:$0]  %s1734_s27, 1024, %s2470_s6, [#allocation4], %s2159_s1, %s2159_s1, %s2160_s21  }
 0x576   :  { %2153 = dma.done.wait [#allocation4], 1024  }
 0x577   :  { %2154 = vsyncadd [#allocation4], 4294966272 }
 0x578   :  { %1743 = vsyncpa [#allocation3], 1 }
 0x579   :  { %1744 = vsyncpa [#allocation6], 1 }
 0x57a   :  { %1745 = vsyncpa [#allocation9], 1 }
 0x57b   :  { %1746 = vsyncpa [#allocation4], 1 }

</bundles_post_ra>
